<compile_context>
chip_gen: v6e
topology: v6e:2x2x1
jax: 0.10.0
libtpu: 0.0.40
codegen_flags: <defaults>
</compile_context>

<pallas_src>
import functools

import jax
import jax.numpy as jnp
from jax.experimental import pallas as pl
from jax.experimental.pallas import tpu as pltpu


# ---------------------------------------------------------------------------
# Kernels
# ---------------------------------------------------------------------------
def _fast_gln_kernel(x_ref, gamma_ref, beta_ref, o_ref, *, eps):
    """Whole (N, D) tensor resident in VMEM: one read, one write."""
    x = x_ref[...].astype(jnp.float32)                       # (N, D)
    mean = jnp.mean(x, keepdims=True)                        # (1, 1)
    xc = x - mean
    var = jnp.mean(xc * xc, keepdims=True)                   # exact two-pass variance
    inv_std = jax.lax.rsqrt(var + jnp.float32(eps))
    scale = gamma_ref[...].astype(jnp.float32) * inv_std     # (1, D)
    o_ref[...] = (xc * scale + beta_ref[...].astype(jnp.float32)).astype(o_ref.dtype)


def _fused_gln_kernel(x_ref, gamma_ref, beta_ref, o_ref,
                      mean_ref, m2_ref, scale_ref, shift_ref,
                      *, n_rows, row_tile, total_count, eps, needs_mask):
    """grid = (2, num_tiles): phase 0 = global reduce, phase 1 = normalize."""
    p = pl.program_id(0)            # 0: reduce, 1: normalize
    i = pl.program_id(1)            # row-tile index
    num_tiles = pl.num_programs(1)
    d = x_ref.shape[-1]

    # ---- phase 0: per-tile centered stats + sequential Chan combine --------
    @pl.when(p == 0)
    def _reduce():
        x = x_ref[...].astype(jnp.float32)                   # (TR, D)
        if needs_mask:
            rows_valid = jnp.minimum(row_tile, n_rows - i * row_tile)
            row_ids = jax.lax.broadcasted_iota(jnp.int32, (row_tile, d), 0)
            valid = row_ids < rows_valid
            t_cnt = (rows_valid * d).astype(jnp.float32)
            xs = jnp.where(valid, x, 0.0)
            t_mean = jnp.sum(xs, keepdims=True) / t_cnt      # (1, 1)
            xc = jnp.where(valid, x - t_mean, 0.0)
        else:
            t_cnt = jnp.float32(row_tile * d)
            t_mean = jnp.sum(x, keepdims=True) / t_cnt       # (1, 1)
            xc = x - t_mean
        t_m2 = jnp.sum(xc * xc, keepdims=True)                # (1, 1) centered sumsq

        @pl.when(i == 0)
        def _init():
            mean_ref[...] = t_mean
            m2_ref[...] = t_m2

        @pl.when(i > 0)
        def _combine():
            # Chan's parallel-variance combine (all earlier tiles are full).
            n_a = i.astype(jnp.float32) * jnp.float32(row_tile * d)
            tot = n_a + t_cnt
            delta = t_mean - mean_ref[...]
            mean_ref[...] = mean_ref[...] + delta * (t_cnt / tot)
            m2_ref[...] = m2_ref[...] + t_m2 + delta * delta * (n_a * t_cnt / tot)

        @pl.when(i == num_tiles - 1)
        def _finalize():
            mean = mean_ref[...]                              # (1, 1)
            var = m2_ref[...] / jnp.float32(total_count)
            inv_std = jax.lax.rsqrt(var + jnp.float32(eps))
            scale = gamma_ref[...].astype(jnp.float32) * inv_std   # (1, D)
            scale_ref[...] = scale
            shift_ref[...] = beta_ref[...].astype(jnp.float32) - mean * scale

    # ---- phase 1: one FMA per element ---------------------------------------
    @pl.when(p == 1)
    def _normalize():
        x = x_ref[...].astype(jnp.float32)
        o_ref[...] = (x * scale_ref[...] + shift_ref[...]).astype(o_ref.dtype)


# ---------------------------------------------------------------------------
# Wrapper helpers
# ---------------------------------------------------------------------------
def _round_up(v, m):
    return (v + m - 1) // m * m


def _vmem_capacity_bytes():
    try:
        return int(pltpu.get_tpu_info().vmem_capacity_bytes)
    except Exception:
        return 64 * 1024 * 1024          # conservative (v7x-sized) default


def _choose_row_tile(n, d, target_f32_bytes):
    """Largest multiple-of-8 row count whose f32 tile is ~target bytes,
    preferring one that divides n exactly (skips tail masking)."""
    row_bytes = max(1, d * 4)
    tr = max(8, (target_f32_bytes // row_bytes) // 8 * 8)
    tr = min(tr, _round_up(n, 8))
    if n % tr != 0:
        t = (tr // 8) * 8
        while t >= 8 and n % t != 0:
            t -= 8
        if t >= 8 and t >= tr // 2:      # only trade down if we keep >=50% of the tile
            tr = t
    return int(tr)
    # TODO(synk): if a single 8-row tile already exceeds the VMEM budget
    # (pathologically large D), the feature dim would also need tiling.


# ---------------------------------------------------------------------------
# Public entry point
# ---------------------------------------------------------------------------
def global_layer_norm(x, gamma=None, beta=None, eps=1e-5,
                      row_tile=None, max_fast_bytes=None):
    """Global layer norm of a 2-D (N, D) tensor: scalar mean/var over all
    elements, then per-feature affine with gamma/beta of shape (1, D).
    gamma=None reproduces elementwise_affine=False."""
    if x.ndim != 2:
        raise RuntimeError("GlobalLayerNorm accepts a 2-D tensor as input")
    n_orig, d_orig = x.shape
    out_dtype = x.dtype
    itemsize = jnp.dtype(x.dtype).itemsize

    # ---- lane-density repack: (N, D) -> (N/k, k*D) when D < 128 -------------
    n, d = n_orig, d_orig
    repack = 1
    if d < 128 and 128 % d == 0 and (128 // d) > 1 and n % (128 // d) == 0:
        repack = 128 // d
        n, d = n // repack, d * repack
        x = x.reshape(n, d)

    # ---- per-feature affine as (1, d) gamma/beta (repeat every d_orig cols) -
    if gamma is not None:
        g = jnp.tile(gamma.astype(jnp.float32).reshape(1, d_orig), (1, repack))
        b0 = (jnp.zeros((1, d_orig), jnp.float32) if beta is None
              else beta.astype(jnp.float32).reshape(1, d_orig))
        b = jnp.tile(b0, (1, repack))
    else:
        g = jnp.ones((1, d), jnp.float32)
        b = jnp.zeros((1, d), jnp.float32)

    vmem_cap = _vmem_capacity_bytes()
    big_vmem = vmem_cap >= 100 * 1024 * 1024          # v5e/v6e (128 MiB) vs v7x (64 MiB)
    f32_bytes = n * d * 4

    # ---- fast path: whole tensor fits comfortably in VMEM -------------------
    if max_fast_bytes is None:
        max_fast_bytes = (8 if big_vmem else 4) * 1024 * 1024
    if f32_bytes <= max_fast_bytes:
        vmem_limit = int(min(0.75 * vmem_cap,
                             max(8 * 1024 * 1024,
                                 2 * n * d * itemsize + 4 * f32_bytes + (1 << 20))))
        out = pl.pallas_call(
            functools.partial(_fast_gln_kernel, eps=eps),
            out_shape=jax.ShapeDtypeStruct((n, d), out_dtype),
            compiler_params=pltpu.CompilerParams(vmem_limit_bytes=vmem_limit),
        )(x, g, b)
        return out.reshape(n_orig, d_orig)

    # ---- streamed path: single fused two-phase pallas_call ------------------
    if row_tile is None:
        target = (8 if big_vmem else 4) * 1024 * 1024
        row_tile = _choose_row_tile(n, d, target)
    row_tile = int(row_tile)
    num_tiles = pl.cdiv(n, row_tile)
    needs_mask = (n % row_tile) != 0

    tile_in = row_tile * d * itemsize
    tile_f32 = row_tile * d * 4
    vmem_limit = int(min(0.75 * vmem_cap,
                         max(16 * 1024 * 1024,
                             4 * tile_in + 4 * tile_f32 + (2 << 20))))

    kernel = functools.partial(
        _fused_gln_kernel, n_rows=n, row_tile=row_tile,
        total_count=n * d, eps=eps, needs_mask=needs_mask)

    out = pl.pallas_call(
        kernel,
        out_shape=jax.ShapeDtypeStruct((n, d), out_dtype),
        grid_spec=pltpu.PrefetchScalarGridSpec(
            num_scalar_prefetch=0,
            grid=(2, num_tiles),
            in_specs=[
                pl.BlockSpec((row_tile, d), lambda p, i: (i, 0)),   # x tiles (both phases)
                pl.BlockSpec((1, d), lambda p, i: (0, 0)),          # gamma (resident)
                pl.BlockSpec((1, d), lambda p, i: (0, 0)),          # beta  (resident)
            ],
            # Phase 0 pins the output window to block 0 (never flushed with
            # garbage); phase 1 walks the real row tiles (lane-dense stores).
            out_specs=pl.BlockSpec((row_tile, d), lambda p, i: (p * i, 0)),
            scratch_shapes=[
                pltpu.VMEM((1, 1), jnp.float32),    # running mean
                pltpu.VMEM((1, 1), jnp.float32),    # running centered sum-of-squares
                pltpu.VMEM((1, d), jnp.float32),    # scale = gamma * rsqrt(var + eps)
                pltpu.VMEM((1, d), jnp.float32),    # shift = beta - mean * scale
            ],
        ),
        compiler_params=pltpu.CompilerParams(
            dimension_semantics=("arbitrary", "arbitrary"),
            vmem_limit_bytes=vmem_limit,
        ),
    )(x, g, b)
    return out.reshape(n_orig, d_orig)


# ---------------------------------------------------------------------------
# Pure-JAX reference (mirrors the PyTorch forward exactly)
# ---------------------------------------------------------------------------
def global_layer_norm_ref(x, gamma=None, beta=None, eps=1e-5):
    mean = jnp.mean(x, axis=(0, 1), keepdims=True)
    var = jnp.mean((x - mean) ** 2, axis=(0, 1), keepdims=True)
    y = (x - mean) / jnp.sqrt(var + eps)
    if gamma is not None:
        beta_ = jnp.zeros_like(gamma) if beta is None else beta
        y = gamma * y + beta_
    return y


if __name__ == "__main__":
    key = jax.random.PRNGKey(0)
    kx, kg, kb, kx2, kx3 = jax.random.split(key, 5)
    eps = 1e-5

    # Case 1: module-default feature dim (32) with affine -> lane-density
    # repack (32 -> 128 lanes) + VMEM-resident fast path.
    N, D = 64, 32
    x = jax.random.normal(kx, (N, D), jnp.float32) * 2.0 + 3.0
    gamma = 1.0 + 0.1 * jax.random.normal(kg, (1, D), jnp.float32)
    beta = 0.1 * jax.random.normal(kb, (1, D), jnp.float32)
    out = jax.block_until_ready(global_layer_norm(x, gamma, beta, eps=eps))
    ref = global_layer_norm_ref(x, gamma, beta, eps=eps)
    assert out.shape == (N, D)
    assert jnp.allclose(out, ref, atol=1e-4, rtol=1e-4), "mismatch (fast path, affine)"

    # Case 2: force the fused streamed two-phase kernel, including a partial
    # (masked) last row tile: N=200, row_tile=64 -> 4 tiles, last has 8 rows.
    N2, D2 = 200, 128
    x2 = jax.random.normal(kx2, (N2, D2), jnp.float32) - 1.5
    g2 = 1.0 + 0.05 * jax.random.normal(kg, (1, D2), jnp.float32)
    b2 = 0.05 * jax.random.normal(kb, (1, D2), jnp.float32)
    out2 = jax.block_until_ready(
        global_layer_norm(x2, g2, b2, eps=eps, max_fast_bytes=0, row_tile=64))
    ref2 = global_layer_norm_ref(x2, g2, b2, eps=eps)
    assert jnp.allclose(out2, ref2, atol=1e-4, rtol=1e-4), "mismatch (streamed path)"

    # Case 3: elementwise_affine=False on a tiny input.
    x3 = jax.random.normal(kx3, (8, 32), jnp.float32)
    out3 = jax.block_until_ready(global_layer_norm(x3, None, None, eps=eps))
    ref3 = global_layer_norm_ref(x3, None, None, eps=eps)
    assert jnp.allclose(out3, ref3, atol=1e-4, rtol=1e-4), "mismatch (no affine)"

    print("KERNEL_OK")
</pallas_src>

<mosaic_0001>
module attributes {stable_mosaic.version = 11 : i64} {
  func.func @_fast_gln_kernel(%arg0: memref<16x128xf32, #tpu.memory_space<vmem>>, %arg1: memref<1x128xf32, #tpu.memory_space<vmem>>, %arg2: memref<1x128xf32, #tpu.memory_space<vmem>>, %arg3: memref<16x128xf32, #tpu.memory_space<vmem>>) attributes {dimension_semantics = [], scalar_prefetch = 0 : i64, scratch_operands = 0 : i64, tpu.core_type = #tpu.core_type<tc>} {
    %c0 = arith.constant 0 : index
    %c0_0 = arith.constant 0 : index
    %0 = vector.load %arg0[%c0, %c0_0] : memref<16x128xf32, #tpu.memory_space<vmem>>, vector<16x128xf32>
    %1 = vector.shape_cast %0 : vector<16x128xf32> to vector<1x16x128xf32>
    %cst = arith.constant dense<0.000000e+00> : vector<1xf32>
    %2 = vector.multi_reduction <add>, %1, %cst [1, 2] : vector<1x16x128xf32> to vector<1xf32>
    %3 = vector.shape_cast %2 : vector<1xf32> to vector<1x1x1xf32>
    %4 = vector.extract %3[0, 0, 0] : f32 from vector<1x1x1xf32>
    %5 = vector.broadcast %4 : f32 to vector<1x1xf32>
    %cst_1 = arith.constant 2.048000e+03 : f32
    %6 = vector.broadcast %cst_1 : f32 to vector<1x1xf32>
    %7 = arith.divf %5, %6 : vector<1x1xf32>
    %8 = vector.broadcast %7 : vector<1x1xf32> to vector<16x128xf32>
    %9 = arith.subf %0, %8 : vector<16x128xf32>
    %10 = arith.mulf %9, %9 : vector<16x128xf32>
    %11 = vector.shape_cast %10 : vector<16x128xf32> to vector<1x16x128xf32>
    %cst_2 = arith.constant dense<0.000000e+00> : vector<1xf32>
    %12 = vector.multi_reduction <add>, %11, %cst_2 [1, 2] : vector<1x16x128xf32> to vector<1xf32>
    %13 = vector.shape_cast %12 : vector<1xf32> to vector<1x1x1xf32>
    %14 = vector.extract %13[0, 0, 0] : f32 from vector<1x1x1xf32>
    %15 = vector.broadcast %14 : f32 to vector<1x1xf32>
    %cst_3 = arith.constant 2.048000e+03 : f32
    %16 = vector.broadcast %cst_3 : f32 to vector<1x1xf32>
    %17 = arith.divf %15, %16 : vector<1x1xf32>
    %cst_4 = arith.constant 9.99999974E-6 : f32
    %18 = vector.broadcast %cst_4 : f32 to vector<1x1xf32>
    %19 = arith.addf %17, %18 : vector<1x1xf32>
    %20 = math.rsqrt %19 : vector<1x1xf32>
    %c0_5 = arith.constant 0 : index
    %c0_6 = arith.constant 0 : index
    %21 = vector.load %arg1[%c0_5, %c0_6] : memref<1x128xf32, #tpu.memory_space<vmem>>, vector<1x128xf32>
    %22 = vector.broadcast %20 : vector<1x1xf32> to vector<1x128xf32>
    %23 = arith.mulf %21, %22 : vector<1x128xf32>
    %24 = vector.broadcast %23 : vector<1x128xf32> to vector<16x128xf32>
    %25 = arith.mulf %9, %24 : vector<16x128xf32>
    %c0_7 = arith.constant 0 : index
    %c0_8 = arith.constant 0 : index
    %26 = vector.load %arg2[%c0_7, %c0_8] : memref<1x128xf32, #tpu.memory_space<vmem>>, vector<1x128xf32>
    %27 = vector.broadcast %26 : vector<1x128xf32> to vector<16x128xf32>
    %28 = arith.addf %25, %27 : vector<16x128xf32>
    %c0_9 = arith.constant 0 : index
    %c0_10 = arith.constant 0 : index
    %29 = vector.load %arg3[%c0_9, %c0_10] : memref<16x128xf32, #tpu.memory_space<vmem>>, vector<16x128xf32>
    tpu.vector_store %arg3[%c0_9, %c0_10], %28 {strides = array<i32>} : memref<16x128xf32, #tpu.memory_space<vmem>>, vector<16x128xf32>,
    return
  }
}

</mosaic_0001>

<bundles_post_ra>
// kernel: tpu_custom_call.1
= control target key start
LH: loop header
LB: loop body
LE: loop exit
PB: predicated region body
PF: predicated region fallthrough
CT: control target
= control target key end

     0   :  { %8 = vsyncpa [#allocation3], 0  ;;  %s197_s0 = inlined_call_operand.hbm [shape: f32[16,128], index: 0, kind: input, shape index: {}]   ;;  %s198_s1 = inlined_call_operand.vmem [shape: f32[1,128], index: 1, kind: input, shape index: {}]   ;;  %s199_s2 = inlined_call_operand.vmem [shape: f32[1,128], index: 2, kind: input, shape index: {}]   ;;  %s200_s3 = inlined_call_operand.hbm [shape: f32[16,128], index: 3, kind: output, shape index: {}]  }
   0x1   :  { %9 = vsyncpa [#allocation4], 0  ;;  %s155_s12 = smov [#allocation2]  }
   0x2   :  { %s15_s13 = sshll.u32 %s155_s12, 4  ;;  %s16_s13 = int_to_ptr.vmem [resolvable:$true] %s15_s13 }
   0x3   :  { %s119_s14 = scalar_lea.vmem %s16_s13, 256  ;;  %p124_p1 = scmp.lt.s32.totalorder %s16_s13, %s16_s13 }
   0x4   :  { %p120_p0 = scmp.ne.s32.totalorder %s16_s13, %s119_s14  ;;  %p125_p2 = scmp.lt.s32.totalorder %s119_s14, %s119_s14 }
   0x6   :  { %p126_p3 = por %p125_p2, %p124_p1 }
   0x8   :  { %p127_p4 = pnand %p126_p3, %p120_p0 }
   0xa   :  { %130 = shalt.err (!%p127_p4)
}
   0xb   :  { %s156_s15 = smov 128   ;;  %s157_s16 = smov 8  }
   0xc   :  { %21 = dma.hbm_to_vmem [thread:$0]  %s197_s0, 256, %s16_s13, [#allocation3], %s156_s15, %s156_s15, %s157_s16  }
   0xd   :  { %151 = dma.done.wait [#allocation3], 256  }
   0xe   :  { %152 = vsyncadd [#allocation3], 4294967040  ;;  %v29_v0 = vld [vmem:[#allocation2] sm:$0xff]  ;;  %v30_v1 = vld [vmem:[#allocation2 + $0x8] sm:$0xff]  ;;  %v65_v27 = vlaneseq  ;;  %s158_s24 = smov [#allocation5]  }
   0xf   :  { %v31_v2 = vadd.f32 %v30_v1, %v29_v0  ;;  %v62_v29 = vld [vmem:[%s198_s1] sm:$0x1]  ;;  %s88_s25 = sshll.u32 %s158_s24, 4  ;;  %s89_s25 = int_to_ptr.vmem [resolvable:$true] %s88_s25 }
  0x10   :  { %v66_v28 = vshrl.u32 %v65_v27, 7  ;;  %v100_v34 = vld [vmem:[%s199_s2] ss:$0 sm:$0xff]  ;;  %s131_s26 = scalar_lea.vmem %s89_s25, 256  ;;  %p136_p6 = scmp.lt.s32.totalorder %s89_s25, %s89_s25 }
  0x11   :  { %32 = vadd.xlane.f32.xlu0 %v31_v2  ;;  %p132_p5 = scmp.ne.s32.totalorder %s89_s25, %s131_s26  ;;  %p137_p7 = scmp.lt.s32.totalorder %s131_s26, %s131_s26 }
  0x12   :  { %v67_v30 = vsub.s32 0, %v66_v28 }
  0x13   :  { %p138_p8 = por %p137_p7, %p136_p6 }
  0x15   :  { %p139_p9 = pnand %p138_p8, %p132_p5 }
  0x9a   :  { %v33_v3 = vpop.xlane.xlu0 %32 }
  0x9b   :  { %v34_v4 = vrot.slane %v33_v3, 4 }
  0x9d   :  { %v35_v5 = vadd.f32 %v34_v4, %v33_v3 }
  0x9f   :  { %v36_v6 = vrot.slane %v35_v5, 2 }
  0xa1   :  { %v37_v7 = vadd.f32 %v36_v6, %v35_v5 }
  0xa3   :  { %v38_v8 = vrot.slane %v37_v7, 1 }
  0xa5   :  { %v39_v9 = vadd.f32 %v38_v8, %v37_v7 }
  0xa7   :  { %101 = vpush %v39_v9 }
  0xd8   :  { %s102_s19 = spop %101 }
  0xd9   :  { %v41_v10 = vstv %s102_s19 }
  0xda   :  { %v43_v11 = vmul.f32 0.00048828125, %v41_v10 }
  0xdc   :  { %v44_v12 = vsub.f32 %v29_v0, %v43_v11  ;;  %v45_v13 = vsub.f32 %v30_v1, %v43_v11 }
  0xde   :  { %v46_v14 = vmul.f32 %v44_v12, %v44_v12  ;;  %v47_v15 = vmul.f32 %v45_v13, %v45_v13 }
  0xe0   :  { %v48_v16 = vadd.f32 %v47_v15, %v46_v14 }
  0xe2   :  { %49 = vadd.xlane.f32.xlu0 %v48_v16 }
 0x16b   :  { %v50_v17 = vpop.xlane.xlu0 %49 }
 0x16c   :  { %v51_v18 = vrot.slane %v50_v17, 4 }
 0x16e   :  { %v52_v19 = vadd.f32 %v51_v18, %v50_v17 }
 0x170   :  { %v53_v20 = vrot.slane %v52_v19, 2 }
 0x172   :  { %v54_v21 = vadd.f32 %v53_v20, %v52_v19 }
 0x174   :  { %v55_v22 = vrot.slane %v54_v21, 1 }
 0x176   :  { %v56_v23 = vadd.f32 %v55_v22, %v54_v21 }
 0x178   :  { %103 = vpush %v56_v23 }
 0x1a9   :  { %s104_s0 = spop %103 }
 0x1aa   :  { %v58_v24 = vstv %s104_s0 }
 0x1ab   :  { %v59_v25 = vmul.f32 0.00048828125, %v58_v24 }
 0x1ad   :  { %v60_v26 = vadd.f32 1e-05, %v59_v25 }
 0x1af   :  { %109 = vrsqrt.f32 %v60_v26 }
 0x1bc   :  { %v110_v31 = vpop.eup %109 }
 0x1bd   :  { %v63_v32 = vmul.f32 %v110_v31, %v62_v29 }
 0x1bf   :  { %v68_v33 = vrot.slane %v63_v32, %v67_v30 }
 0x1c1   :  { %v70_v35 = vmul.f32 %v68_v33, %v44_v12  ;;  %v71_v36 = vmul.f32 %v68_v33, %v45_v13 }
 0x1c3   :  { %v79_v37 = vadd.f32 %v100_v34, %v70_v35  ;;  %v80_v38 = vadd.f32 %v100_v34, %v71_v36 }
 0x1c5   :  { %81 = vst [vmem:[#allocation5] sm:$0xff] %v79_v37  ;;  %82 = vst [vmem:[#allocation5 + $0x8] sm:$0xff] %v80_v38 }
 0x1c6   :  { %142 = shalt.err (!%p139_p9)
}
 0x1c7   :  { %94 = dma.vmem_to_hbm [thread:$0]  %s89_s25, 256, %s200_s3, [#allocation4], %s156_s15, %s156_s15, %s157_s16  }
 0x1c8   :  { %153 = dma.done.wait [#allocation4], 256  }
 0x1c9   :  { %154 = vsyncadd [#allocation4], 4294967040 }
 0x1ca   :  { %98 = vsyncpa [#allocation3], 1 }
 0x1cb   :  { %99 = vsyncpa [#allocation4], 1 }

</bundles_post_ra>
